<compile_context>
chip_gen: v7x
topology: tpu7x:2x2x1
jax: 0.10.0
libtpu: 0.0.40
codegen_flags: <defaults>
</compile_context>

<pallas_src>
import functools

import jax
import jax.numpy as jnp
from jax import lax
from jax.experimental import pallas as pl
from jax.experimental.pallas import tpu as pltpu

LEAK = 0.2


def _leaky(h, leak):
    # Equivalent to LeakyReLU for 0 < leak < 1: max(h, leak*h).
    return jnp.maximum(h, leak * h)


def _pointwise_kernel(x_ref, w0_ref, b0_ref, w1_ref, b1_ref, w2_ref, b2_ref,
                      o_ref, *, sub, leak, matmul_dtype):
    # Hoist all (tiny) weight loads / casts out of the inner loop.
    w0 = w0_ref[...]                              # (2ch, 1)  f32
    b0 = b0_ref[...]                              # (2ch, 1)  f32
    w1 = w1_ref[...].astype(matmul_dtype)         # (ch, 2ch) matmul dtype
    b1 = b1_ref[...]                              # (ch, 1)   f32
    w2 = w2_ref[...]                              # (ch, 1)   f32
    b2 = b2_ref[0]                                # scalar from SMEM

    tp = x_ref.shape[1]
    n_sub = tp // sub

    def body(j, carry):
        start = pl.multiple_of(j * sub, sub)
        xc = x_ref[:, pl.ds(start, sub)]                            # (1, sub)

        # conv0: 1 -> 2ch, broadcast outer product on the VPU + LeakyReLU.
        h0 = _leaky(w0 * xc + b0, leak)                             # (2ch, sub)

        # conv1: 2ch -> ch, MXU matmul with N = pixel count (lane-dense),
        # f32 accumulation, then bias + LeakyReLU on the VPU.
        h1 = jnp.dot(w1, h0.astype(matmul_dtype),
                     preferred_element_type=jnp.float32) + b1       # (ch, sub)
        h1 = _leaky(h1, leak)

        # conv2: ch -> 1, VPU multiply + sublane reduce (XLU), f32.
        oc = jnp.sum(w2 * h1, axis=0, keepdims=True) + b2           # (1, sub)

        o_ref[:, pl.ds(start, sub)] = oc.astype(o_ref.dtype)
        return carry

    lax.fori_loop(0, n_sub, body, 0, unroll=min(n_sub, 4))


def neural_pointwise_net(x_nchw, params, *, tp=8192, sub=512,
                         matmul_dtype=jnp.float32):
    """x_nchw: (N, 1, H, W) float32. Returns (N, 1, H, W) float32.

    tp  : pixels per grid step (lane-dense block width).
    sub : pixels per inner-loop chunk (bounds vreg live ranges).
    matmul_dtype: jnp.bfloat16 recommended on v6e/v7x (f32 accumulation kept).
    """
    w0, b0, w1, b1, w2, b2 = params
    N, C, H, W = x_nchw.shape
    assert C == 1
    assert sub % 128 == 0 and tp % sub == 0

    ch2 = w0.shape[0]   # 2*ch
    ch = w1.shape[0]    # ch

    M = N * H * W
    # Effective block: no larger than needed, always a multiple of `sub`.
    tp_eff = max(sub, min(tp, pl.cdiv(M, sub) * sub))
    Mp = pl.cdiv(M, tp_eff) * tp_eff

    x_flat = x_nchw.reshape(1, M)
    if Mp != M:
        x_flat = jnp.pad(x_flat, ((0, 0), (0, Mp - M)))

    kernel = functools.partial(_pointwise_kernel, sub=sub, leak=LEAK,
                               matmul_dtype=matmul_dtype)

    out_flat = pl.pallas_call(
        kernel,
        out_shape=jax.ShapeDtypeStruct((1, Mp), jnp.float32),
        grid_spec=pltpu.PrefetchScalarGridSpec(
            num_scalar_prefetch=0,
            grid=(Mp // tp_eff,),
            in_specs=[
                pl.BlockSpec((1, tp_eff), lambda i: (0, i)),   # x pixel slab
                pl.BlockSpec((ch2, 1), lambda i: (0, 0)),      # w0 (2ch, 1)
                pl.BlockSpec((ch2, 1), lambda i: (0, 0)),      # b0 (2ch, 1)
                pl.BlockSpec((ch, ch2), lambda i: (0, 0)),     # w1 (ch, 2ch)
                pl.BlockSpec((ch, 1), lambda i: (0, 0)),       # b1 (ch, 1)
                pl.BlockSpec((ch, 1), lambda i: (0, 0)),       # w2 (ch, 1)
                pl.BlockSpec(memory_space=pltpu.MemorySpace.SMEM),  # b2 scalar
            ],
            out_specs=pl.BlockSpec((1, tp_eff), lambda i: (0, i)),
        ),
        compiler_params=pltpu.CompilerParams(
            dimension_semantics=("parallel",)),   # shards across v7x's 2 TCs
    )(x_flat, w0, b0, w1, b1, w2, b2)

    return out_flat[:, :M].reshape(N, 1, H, W)


def init_params(key, ch=64):
    """PyTorch Conv2d default init (U(-1/sqrt(fan_in), +)), channels-first."""
    k0, k1, k2, k3, k4, k5 = jax.random.split(key, 6)

    def u(k, shape, fan_in):
        bound = 1.0 / jnp.sqrt(fan_in)
        return jax.random.uniform(k, shape, jnp.float32, -bound, bound)

    w0 = u(k0, (2 * ch, 1), 1.0)          # conv0 weight (2ch,1,1,1) -> (2ch, 1)
    b0 = u(k1, (2 * ch, 1), 1.0)
    w1 = u(k2, (ch, 2 * ch), 2.0 * ch)    # conv1 weight (ch,2ch,1,1) -> (ch, 2ch)
    b1 = u(k3, (ch, 1), 2.0 * ch)
    w2 = u(k4, (ch, 1), float(ch))        # conv2 weight (1,ch,1,1) -> (ch, 1)
    b2 = u(k5, (1,), float(ch))           # scalar bias, lives in SMEM
    return (w0, b0, w1, b1, w2, b2)


def reference_forward(x_nchw, params, leak=LEAK):
    """Plain-JAX reference of the PyTorch forward (channels-first math)."""
    w0, b0, w1, b1, w2, b2 = params
    N, C, H, W = x_nchw.shape
    xf = x_nchw.reshape(1, N * H * W)                       # (1, M)
    h = w0 * xf + b0                                        # (2ch, M)
    h = jnp.where(h > 0, h, leak * h)
    h = w1 @ h + b1                                         # (ch, M)
    h = jnp.where(h > 0, h, leak * h)
    out = jnp.sum(w2 * h, axis=0, keepdims=True) + b2[0]    # (1, M)
    return out.reshape(N, 1, H, W)


if __name__ == "__main__":
    key = jax.random.PRNGKey(0)
    kx, kp = jax.random.split(key)

    ch = 64                                                   # module default
    x = jax.random.normal(kx, (2, 1, 16, 16), jnp.float32)    # NCHW, C_in=1
    params = init_params(kp, ch=ch)

    ref = reference_forward(x, params)

    # f32 MXU path (safe on all generations) — tight tolerance.
    out = jax.block_until_ready(neural_pointwise_net(x, params))
    assert out.shape == (2, 1, 16, 16)
    assert jnp.allclose(out, ref, atol=1e-5, rtol=1e-5)

    # bf16 MXU-input path (recommended on v6e/v7x) — f32 accumulation, looser tol.
    out_bf16 = jax.block_until_ready(
        neural_pointwise_net(x, params, matmul_dtype=jnp.bfloat16))
    assert jnp.allclose(out_bf16, ref, atol=5e-2, rtol=5e-2)

    print("KERNEL_OK")
</pallas_src>

<mosaic_0001>
module attributes {stable_mosaic.version = 11 : i64} {
  func.func @_pointwise_kernel(%arg0: i32, %arg1: memref<1x512xf32, #tpu.memory_space<vmem>>, %arg2: memref<128x1xf32, #tpu.memory_space<vmem>>, %arg3: memref<128x1xf32, #tpu.memory_space<vmem>>, %arg4: memref<64x128xf32, #tpu.memory_space<vmem>>, %arg5: memref<64x1xf32, #tpu.memory_space<vmem>>, %arg6: memref<64x1xf32, #tpu.memory_space<vmem>>, %arg7: memref<1xf32, #tpu.memory_space<smem>>, %arg8: memref<1x512xf32, #tpu.memory_space<vmem>>) attributes {dimension_semantics = [#tpu.dimension_semantics<parallel>], iteration_bounds = array<i64: 1>, scalar_prefetch = 0 : i64, scratch_operands = 0 : i64, tpu.core_type = #tpu.core_type<tc>, window_params = [{transform_indices = @transform_0, window_bounds = array<i64: 1, 512>}, {pipeline_mode = #tpu.pipeline_mode<synchronous>, transform_indices = @transform_1, window_bounds = array<i64: 128, 1>}, {pipeline_mode = #tpu.pipeline_mode<synchronous>, transform_indices = @transform_2, window_bounds = array<i64: 128, 1>}, {pipeline_mode = #tpu.pipeline_mode<synchronous>, transform_indices = @transform_3, window_bounds = array<i64: 64, 128>}, {pipeline_mode = #tpu.pipeline_mode<synchronous>, transform_indices = @transform_4, window_bounds = array<i64: 64, 1>}, {pipeline_mode = #tpu.pipeline_mode<synchronous>, transform_indices = @transform_5, window_bounds = array<i64: 64, 1>}, {transform_indices = @transform_6, window_bounds = array<i64: 1>}, {transform_indices = @transform_7, window_bounds = array<i64: 1, 512>}]} {
    %c0 = arith.constant 0 : index
    %c0_0 = arith.constant 0 : index
    %0 = vector.load %arg2[%c0, %c0_0] : memref<128x1xf32, #tpu.memory_space<vmem>>, vector<128x1xf32>
    %c0_1 = arith.constant 0 : index
    %c0_2 = arith.constant 0 : index
    %1 = vector.load %arg3[%c0_1, %c0_2] : memref<128x1xf32, #tpu.memory_space<vmem>>, vector<128x1xf32>
    %c0_3 = arith.constant 0 : index
    %c0_4 = arith.constant 0 : index
    %2 = vector.load %arg4[%c0_3, %c0_4] : memref<64x128xf32, #tpu.memory_space<vmem>>, vector<64x128xf32>
    %c0_5 = arith.constant 0 : index
    %c0_6 = arith.constant 0 : index
    %3 = vector.load %arg5[%c0_5, %c0_6] : memref<64x1xf32, #tpu.memory_space<vmem>>, vector<64x1xf32>
    %c0_7 = arith.constant 0 : index
    %c0_8 = arith.constant 0 : index
    %4 = vector.load %arg6[%c0_7, %c0_8] : memref<64x1xf32, #tpu.memory_space<vmem>>, vector<64x1xf32>
    %c0_9 = arith.constant 0 : index
    %5 = memref.load %arg7[%c0_9] : memref<1xf32, #tpu.memory_space<smem>>
    %c0_i32 = arith.constant 0 : i32
    %c512_i32 = arith.constant 512 : i32
    %6 = arith.muli %c0_i32, %c512_i32 : i32
    %7 = tpu.assume_multiple %6, 512 : i32
    %c0_10 = arith.constant 0 : index
    %8 = arith.index_cast %7 : i32 to index
    %9 = vector.load %arg1[%c0_10, %8] : memref<1x512xf32, #tpu.memory_space<vmem>>, vector<1x512xf32>
    %10 = vector.broadcast %0 : vector<128x1xf32> to vector<128x512xf32>
    %11 = vector.broadcast %9 : vector<1x512xf32> to vector<128x512xf32>
    %12 = arith.mulf %10, %11 : vector<128x512xf32>
    %13 = vector.broadcast %1 : vector<128x1xf32> to vector<128x512xf32>
    %14 = arith.addf %12, %13 : vector<128x512xf32>
    %cst = arith.constant 2.000000e-01 : f32
    %15 = vector.broadcast %cst : f32 to vector<128x512xf32>
    %16 = arith.mulf %15, %14 : vector<128x512xf32>
    %17 = arith.maximumf %14, %16 : vector<128x512xf32>
    %cst_11 = arith.constant dense<0.000000e+00> : vector<64x512xf32>
    %18 = tpu.matmul %2, %17, %cst_11 {dimension_numbers = #tpu.dot_dimension_numbers<[1], [0], [0], [1], [0, 0, 1, 1], [], []>} : vector<64x128xf32>, vector<128x512xf32>, vector<64x512xf32> -> vector<64x512xf32>
    %19 = vector.broadcast %3 : vector<64x1xf32> to vector<64x512xf32>
    %20 = arith.addf %18, %19 : vector<64x512xf32>
    %cst_12 = arith.constant 2.000000e-01 : f32
    %21 = vector.broadcast %cst_12 : f32 to vector<64x512xf32>
    %22 = arith.mulf %21, %20 : vector<64x512xf32>
    %23 = arith.maximumf %20, %22 : vector<64x512xf32>
    %24 = vector.broadcast %4 : vector<64x1xf32> to vector<64x512xf32>
    %25 = arith.mulf %24, %23 : vector<64x512xf32>
    %cst_13 = arith.constant dense<0.000000e+00> : vector<512xf32>
    %26 = vector.multi_reduction <add>, %25, %cst_13 [0] : vector<64x512xf32> to vector<512xf32>
    %27 = vector.shape_cast %26 : vector<512xf32> to vector<1x512xf32>
    %28 = vector.broadcast %5 : f32 to vector<1x512xf32>
    %29 = arith.addf %27, %28 : vector<1x512xf32>
    %c0_14 = arith.constant 0 : index
    %30 = arith.index_cast %7 : i32 to index
    %31 = vector.load %arg8[%c0_14, %30] : memref<1x512xf32, #tpu.memory_space<vmem>>, vector<1x512xf32>
    tpu.vector_store %arg8[%c0_14, %30], %29 {strides = array<i32>} : memref<1x512xf32, #tpu.memory_space<vmem>>, vector<1x512xf32>,
    %c1_i32 = arith.constant 1 : i32
    return
  }
  func.func @transform_0(%arg0: i32) -> (i32, i32) {
    %c0_i32 = arith.constant 0 : i32
    %c0_i32_0 = arith.constant 0 : i32
    return %c0_i32, %arg0 : i32, i32
  }
  func.func @transform_1(%arg0: i32) -> (i32, i32) {
    %c0_i32 = arith.constant 0 : i32
    %c0_i32_0 = arith.constant 0 : i32
    %c0_i32_1 = arith.constant 0 : i32
    return %c0_i32, %c0_i32_0 : i32, i32
  }
  func.func @transform_2(%arg0: i32) -> (i32, i32) {
    %c0_i32 = arith.constant 0 : i32
    %c0_i32_0 = arith.constant 0 : i32
    %c0_i32_1 = arith.constant 0 : i32
    return %c0_i32, %c0_i32_0 : i32, i32
  }
  func.func @transform_3(%arg0: i32) -> (i32, i32) {
    %c0_i32 = arith.constant 0 : i32
    %c0_i32_0 = arith.constant 0 : i32
    %c0_i32_1 = arith.constant 0 : i32
    return %c0_i32, %c0_i32_0 : i32, i32
  }
  func.func @transform_4(%arg0: i32) -> (i32, i32) {
    %c0_i32 = arith.constant 0 : i32
    %c0_i32_0 = arith.constant 0 : i32
    %c0_i32_1 = arith.constant 0 : i32
    return %c0_i32, %c0_i32_0 : i32, i32
  }
  func.func @transform_5(%arg0: i32) -> (i32, i32) {
    %c0_i32 = arith.constant 0 : i32
    %c0_i32_0 = arith.constant 0 : i32
    %c0_i32_1 = arith.constant 0 : i32
    return %c0_i32, %c0_i32_0 : i32, i32
  }
  func.func @transform_6(%arg0: i32) -> i32 {
    %c0_i32 = arith.constant 0 : i32
    %c0_i32_0 = arith.constant 0 : i32
    return %c0_i32 : i32
  }
  func.func @transform_7(%arg0: i32) -> (i32, i32) {
    %c0_i32 = arith.constant 0 : i32
    %c0_i32_0 = arith.constant 0 : i32
    return %c0_i32, %arg0 : i32, i32
  }
}

</mosaic_0001>

<bundles_post_ra>
// kernel: tpu_custom_call.1
= control target key start
LH: loop header
LB: loop body
LE: loop exit
PB: predicated region body
PF: predicated region fallthrough
CT: control target
= control target key end

     0   :  { %v1124_v2 = vmov 0   ;;  %s1651_s0 = inlined_call_operand.vmem [shape: f32[1,512], index: 0, kind: input, shape index: {}]   ;;  %s1652_s1 = inlined_call_operand.vmem [shape: f32[128,1], index: 1, kind: input, shape index: {}]   ;;  %s1653_s2 = inlined_call_operand.vmem [shape: f32[128,1], index: 2, kind: input, shape index: {}]   ;;  %s1654_s3 = inlined_call_operand.vmem [shape: f32[64,128], index: 3, kind: input, shape index: {}]   ;;  %s1655_s4 = inlined_call_operand.vmem [shape: f32[64,1], index: 4, kind: input, shape index: {}]   ;;  %s1656_s5 = inlined_call_operand.vmem [shape: f32[64,1], index: 5, kind: input, shape index: {}]   ;;  %s1657_s6 = inlined_call_operand.<no memory space> [shape: f32[1], index: 6, kind: input, shape index: {}]   ;;  %s1658_s7 = inlined_call_operand.hbm [shape: f32[1,512], index: 7, kind: output, shape index: {}]  }
   0x1   :  { %v44_v0 = vld [vmem:[%s1653_s2] sm:$0xff]  ;;  %1099 = vset.pattern.permute.xlu1 %v1124_v2  ;;  %1098 = vset.pattern.permute.xlu0 %v1124_v2  ;;  %v45_v3 = vld [vmem:[%s1653_s2 + $0x8] sm:$0xff]  ;;  %v31_v5 = vld [vmem:[%s1652_s1 + $0x18] sm:$0xff] }
   0x2   :  { %v28_v1 = vld [vmem:[%s1652_s1] sm:$0xff]  ;;  %253 = vperm.xlu1 %1099, %v44_v0   ;;  %v29_v4 = vld [vmem:[%s1652_s1 + $0x8] sm:$0xff]  ;;  %v30_v6 = vld [vmem:[%s1652_s1 + $0x10] sm:$0xff] }
   0x3   :  { %88 = vperm.xlu0 %1098, %v28_v1   ;;  %v47_v7 = vld [vmem:[%s1653_s2 + $0x18] sm:$0xff]  ;;  %v46_v8 = vld [vmem:[%s1653_s2 + $0x10] sm:$0xff]  ;;  %v33_v9 = vld [vmem:[%s1652_s1 + $0x28] sm:$0xff] }
   0x4   :  { %v32_v10 = vld [vmem:[%s1652_s1 + $0x20] sm:$0xff] }
   0x6   :  { %258 = vperm.xlu1 %1099, %v45_v3  }
   0x7   :  { %93 = vperm.xlu0 %1098, %v29_v4  }
   0xa   :  { %103 = vperm.xlu1 %1099, %v31_v5  }
   0xb   :  { %98 = vperm.xlu0 %1098, %v30_v6  }
   0xe   :  { %268 = vperm.xlu1 %1099, %v47_v7  }
   0xf   :  { %263 = vperm.xlu0 %1098, %v46_v8  }
  0x10   :  { %13 = vsyncpa [#allocation4], 0  ;;  %v49_v11 = vld [vmem:[%s1653_s2 + $0x28] sm:$0xff]  ;;  %v48_v12 = vld [vmem:[%s1653_s2 + $0x20] sm:$0xff]  ;;  %v1125_v45 = vmov 0.0   ;;  %v167_v50 = vlaneseq  ;;  %s1127_s17 = smov [#allocation3]  }
  0x11   :  { %v35_v13 = vld [vmem:[%s1652_s1 + $0x38] sm:$0xff]  ;;  %v34_v14 = vld [vmem:[%s1652_s1 + $0x30] sm:$0xff]  ;;  %v37_v17 = vld [vmem:[%s1652_s1 + $0x48] sm:$0xff]  ;;  %627 = vmatprep.mubr.f32.mxu0 %v1125_v45  ;;  %740 = vmatprep.mubr.f32.mxu1 %v1125_v45  ;;  %s1022_s18 = sshll.u32 %s1127_s17, 4  ;;  %s1023_s18 = int_to_ptr.vmem [resolvable:$true] %s1022_s18 }
  0x12   :  { %113 = vperm.xlu1 %1099, %v33_v9   ;;  %v51_v15 = vld [vmem:[%s1653_s2 + $0x38] sm:$0xff]  ;;  %v50_v16 = vld [vmem:[%s1653_s2 + $0x30] sm:$0xff]  ;;  %v36_v18 = vld [vmem:[%s1652_s1 + $0x40] sm:$0xff]  ;;  %v1315_v51 = vshrl.u32 %v167_v50, 7  ;;  %vm1013_vm0 = vcmp.lt.s32.totalorder %v167_v50, 512  ;;  %p1105_p1 = scmp.lt.s32.totalorder %s1023_s18, %s1023_s18 }
  0x13   :  { %108 = vperm.xlu0 %1098, %v32_v10   ;;  %v53_v19 = vld [vmem:[%s1653_s2 + $0x48] sm:$0xff]  ;;  %v52_v20 = vld [vmem:[%s1653_s2 + $0x40] sm:$0xff]  ;;  %v39_v21 = vld [vmem:[%s1652_s1 + $0x58] sm:$0xff] }
  0x14   :  { %v38_v22 = vld [vmem:[%s1652_s1 + $0x50] sm:$0xff]  ;;  %v55_v23 = vld [vmem:[%s1653_s2 + $0x58] sm:$0xff]  ;;  %v41_v25 = vld [vmem:[%s1652_s1 + $0x68] sm:$0xff]  ;;  %v169_v52 = vsub.s32 0, %v1315_v51  ;;  %v173_v53 = vsub.s32 1, %v1315_v51  ;;  %v181_v54 = vsub.s32 3, %v1315_v51 }
  0x15   :  { %v54_v24 = vld [vmem:[%s1653_s2 + $0x50] sm:$0xff]  ;;  %v40_v26 = vld [vmem:[%s1652_s1 + $0x60] sm:$0xff]  ;;  %v57_v27 = vld [vmem:[%s1653_s2 + $0x68] sm:$0xff]  ;;  %v177_v56 = vsub.s32 2, %v1315_v51 }
  0x16   :  { %278 = vperm.xlu1 %1099, %v49_v11   ;;  %v56_v28 = vld [vmem:[%s1653_s2 + $0x60] sm:$0xff]  ;;  %v43_v29 = vld [vmem:[%s1652_s1 + $0x78] sm:$0xff]  ;;  %v42_v30 = vld [vmem:[%s1652_s1 + $0x70] sm:$0xff] }
  0x17   :  { %273 = vperm.xlu0 %1098, %v48_v12   ;;  %v59_v31 = vld [vmem:[%s1653_s2 + $0x78] sm:$0xff]  ;;  %v58_v32 = vld [vmem:[%s1653_s2 + $0x70] sm:$0xff]  ;;  %v69_v33 = vld [vmem:[%s1655_s4 + $0x8] sm:$0xff] }
  0x18   :  { %v68_v34 = vld [vmem:[%s1655_s4] sm:$0xff]  ;;  %v71_v35 = vld [vmem:[%s1655_s4 + $0x18] sm:$0xff]  ;;  %v70_v36 = vld [vmem:[%s1655_s4 + $0x10] sm:$0xff] }
  0x19   :  { %v76_v37 = vld [vmem:[%s1656_s5] sm:$0xff]  ;;  %v73_v39 = vld [vmem:[%s1655_s4 + $0x28] sm:$0xff]  ;;  %v74_v41 = vld [vmem:[%s1655_s4 + $0x30] sm:$0xff] }
  0x1a   :  { %123 = vperm.xlu1 %1099, %v35_v13   ;;  %v72_v38 = vld [vmem:[%s1655_s4 + $0x20] sm:$0xff]  ;;  %v77_v40 = vld [vmem:[%s1656_s5 + $0x8] sm:$0xff]  ;;  %v78_v42 = vld [vmem:[%s1656_s5 + $0x10] sm:$0xff] }
  0x1b   :  { %118 = vperm.xlu0 %1098, %v34_v14   ;;  %v75_v43 = vld [vmem:[%s1655_s4 + $0x38] sm:$0xff]  ;;  %v81_v46 = vld [vmem:[%s1656_s5 + $0x28] sm:$0xff]  ;;  %v80_v47 = vld [vmem:[%s1656_s5 + $0x20] sm:$0xff] }
  0x1c   :  { %v79_v44 = vld [vmem:[%s1656_s5 + $0x18] sm:$0xff]  ;;  %v82_v49 = vld [vmem:[%s1656_s5 + $0x30] sm:$0xff]  ;;  %v85_v55 = vld [vmem:[%s1651_s0] sm:$0xf] }
  0x1d   :  { %v83_v48 = vld [vmem:[%s1656_s5 + $0x38] sm:$0xff]  ;;  %v1324_v57 = vrot.slane %v85_v55, %v169_v52  ;;  %v1326_v58 = vrot.slane %v85_v55, %v173_v53  ;;  %v1328_v59 = vrot.slane %v85_v55, %v181_v54  ;;  %v1330_v60 = vrot.slane %v85_v55, %v177_v56 }
  0x1e   :  { %288 = vperm.xlu1 %1099, %v51_v15  }
  0x1f   :  { %283 = vperm.xlu0 %1098, %v50_v16  }
  0x22   :  { %133 = vperm.xlu1 %1099, %v37_v17  }
  0x23   :  { %128 = vperm.xlu0 %1098, %v36_v18  }
  0x26   :  { %298 = vperm.xlu1 %1099, %v53_v19  }
  0x27   :  { %293 = vperm.xlu0 %1098, %v52_v20  }
  0x2a   :  { %143 = vperm.xlu1 %1099, %v39_v21  }
  0x2b   :  { %138 = vperm.xlu0 %1098, %v38_v22  }
  0x2e   :  { %308 = vperm.xlu1 %1099, %v55_v23  }
  0x2f   :  { %303 = vperm.xlu0 %1098, %v54_v24  }
  0x32   :  { %153 = vperm.xlu1 %1099, %v41_v25  }
  0x33   :  { %148 = vperm.xlu0 %1098, %v40_v26  }
  0x36   :  { %318 = vperm.xlu1 %1099, %v57_v27  }
  0x37   :  { %313 = vperm.xlu0 %1098, %v56_v28  }
  0x3a   :  { %163 = vperm.xlu1 %1099, %v43_v29  }
  0x3b   :  { %158 = vperm.xlu0 %1098, %v42_v30  }
  0x3e   :  { %328 = vperm.xlu1 %1099, %v59_v31  }
  0x3f   :  { %323 = vperm.xlu0 %1098, %v58_v32  }
  0x42   :  { %530 = vperm.xlu1 %1099, %v69_v33  }
  0x43   :  { %525 = vperm.xlu0 %1098, %v68_v34  }
  0x46   :  { %540 = vperm.xlu1 %1099, %v71_v35  }
  0x47   :  { %535 = vperm.xlu0 %1098, %v70_v36  }
  0x4a   :  { %855 = vperm.xlu1 %1099, %v76_v37  }
  0x4b   :  { %545 = vperm.xlu0 %1098, %v72_v38  }
  0x4e   :  { %550 = vperm.xlu1 %1099, %v73_v39  }
  0x4f   :  { %860 = vperm.xlu0 %1098, %v77_v40  }
  0x52   :  { %555 = vperm.xlu1 %1099, %v74_v41  }
  0x53   :  { %865 = vperm.xlu0 %1098, %v78_v42  }
  0x56   :  { %560 = vperm.xlu1 %1099, %v75_v43  }
  0x57   :  { %870 = vperm.xlu0 %1098, %v79_v44  }
  0x5a   :  { %880 = vperm.xlu1 %1099, %v81_v46  }
  0x5b   :  { %875 = vperm.xlu0 %1098, %v80_v47  }
  0x5e   :  { %890 = vperm.xlu1 %1099, %v83_v48  }
  0x5f   :  { %885 = vperm.xlu0 %1098, %v82_v49  }
  0x81   :  { %v254_v61 = vpop.permute.xlu1 %253 }
  0x82   :  { %v89_v62 = vpop.permute.xlu0 %88 }
  0x83   :  { %v187_v63 = vmul.f32 %v1324_v57, %v89_v62  ;;  %v188_v0 = vmul.f32 %v1326_v58, %v89_v62  ;;  %v190_v1 = vmul.f32 %v1328_v59, %v89_v62  ;;  %v189_v2 = vmul.f32 %v1330_v60, %v89_v62 }
  0x85   :  { %v332_v3 = vadd.f32 %v254_v61, %v188_v0  ;;  %v334_v4 = vadd.f32 %v254_v61, %v190_v1  ;;  %v1336_v5 = vadd.f32 %v254_v61, %v187_v63  ;;  %v259_v6 = vpop.permute.xlu1 %258  ;;  %v333_v15 = vadd.f32 %v254_v61, %v189_v2 }
  0x86   :  { %v94_v7 = vpop.permute.xlu0 %93 }
  0x87   :  { %v191_v8 = vmul.f32 %v1324_v57, %v94_v7  ;;  %v192_v9 = vmul.f32 %v1326_v58, %v94_v7  ;;  %v193_v10 = vmul.f32 %v1330_v60, %v94_v7  ;;  %v194_v11 = vmul.f32 %v1328_v59, %v94_v7 }
  0x88   :  { %v396_v12 = vmul.f32 0.2, %v332_v3  ;;  %v398_v13 = vmul.f32 0.2, %v334_v4  ;;  %v395_v14 = vmul.f32 0.2, %v1336_v5 }
  0x89   :  { %v336_v16 = vadd.f32 %v259_v6, %v192_v9  ;;  %v104_v17 = vpop.permute.xlu1 %103  ;;  %v338_v19 = vadd.f32 %v259_v6, %v194_v11  ;;  %v335_v20 = vadd.f32 %v259_v6, %v191_v8  ;;  %v337_v21 = vadd.f32 %v259_v6, %v193_v10 }
  0x8a   :  { %v99_v18 = vpop.permute.xlu0 %98  ;;  %v460_v22 = vmax.f32 %v332_v3, %v396_v12  ;;  %v462_v23 = vmax.f32 %v334_v4, %v398_v13  ;;  %v459_v24 = vmax.f32 %v1336_v5, %v395_v14  ;;  %v397_v25 = vmul.f32 0.2, %v333_v15 }
  0x8b   :  { %v199_v26 = vmul.f32 %v1324_v57, %v104_v17  ;;  %v200_v27 = vmul.f32 %v1326_v58, %v104_v17  ;;  %v202_v28 = vmul.f32 %v1328_v59, %v104_v17  ;;  %v400_v29 = vmul.f32 0.2, %v336_v16 }
  0x8c   :  { %v195_v30 = vmul.f32 %v1324_v57, %v99_v18  ;;  %v196_v31 = vmul.f32 %v1326_v58, %v99_v18  ;;  %v198_v32 = vmul.f32 %v1328_v59, %v99_v18  ;;  %v402_v35 = vmul.f32 0.2, %v338_v19 }
  0x8d   :  { %v269_v33 = vpop.permute.xlu1 %268  ;;  %v201_v36 = vmul.f32 %v1330_v60, %v104_v17  ;;  %v197_v40 = vmul.f32 %v1330_v60, %v99_v18  ;;  %v464_v44 = vmax.f32 %v336_v16, %v400_v29  ;;  %v399_v46 = vmul.f32 0.2, %v335_v20 }
  0x8e   :  { %v264_v34 = vpop.permute.xlu0 %263  ;;  %v1351_v37 = vadd.f32 %v269_v33, %v199_v26  ;;  %v344_v38 = vadd.f32 %v269_v33, %v200_v27  ;;  %v1353_v39 = vadd.f32 %v269_v33, %v202_v28  ;;  %v401_v47 = vmul.f32 0.2, %v337_v21 }
  0x8f   :  { %v1356_v41 = vadd.f32 %v264_v34, %v195_v30  ;;  %v340_v42 = vadd.f32 %v264_v34, %v196_v31  ;;  %v1358_v43 = vadd.f32 %v264_v34, %v198_v32  ;;  %v461_v48 = vmax.f32 %v333_v15, %v397_v25 }
  0x90   :  { %v1360_v49 = vadd.f32 %v269_v33, %v201_v36  ;;  %v408_v52 = vmul.f32 0.2, %v344_v38  ;;  %v466_v54 = vmax.f32 %v338_v19, %v402_v35  ;;  %v407_v61 = vmul.f32 0.2, %v1351_v37 }
  0x91   :  { %v404_v53 = vmul.f32 0.2, %v340_v42  ;;  %v114_v55 = vpop.permute.xlu1 %113  ;;  %v410_v62 = vmul.f32 0.2, %v1353_v39  ;;  %v341_v63 = vadd.f32 %v264_v34, %v197_v40  ;;  %v1030_v0 = vpack.c.bf16 %v464_v44, %v460_v22 }
  0x92   :  { %v109_v56 = vpop.permute.xlu0 %108  ;;  %v403_v1 = vmul.f32 0.2, %v1356_v41  ;;  %v406_v2 = vmul.f32 0.2, %v1358_v43  ;;  %v1062_v3 = vpack.c.bf16 %v466_v54, %v462_v23  ;;  %v207_v4 = vmul.f32 %v1324_v57, %v114_v55 }
  0x93   :  { %1031 = vmatprep.subr.bf16.mxu0 %v1030_v0  ;;  %v208_v5 = vmul.f32 %v1326_v58, %v114_v55  ;;  %v210_v6 = vmul.f32 %v1328_v59, %v114_v55  ;;  %v463_v7 = vmax.f32 %v335_v20, %v399_v46  ;;  %v465_v8 = vmax.f32 %v337_v21, %v401_v47 }
  0x94   :  { %1063 = vmatprep.subr.bf16.mxu1 %v1062_v3  ;;  %v203_v9 = vmul.f32 %v1324_v57, %v109_v56  ;;  %v204_v10 = vmul.f32 %v1326_v58, %v109_v56  ;;  %v468_v13 = vmax.f32 %v340_v42, %v404_v53  ;;  %v472_v14 = vmax.f32 %v344_v38, %v408_v52 }
  0x95   :  { %v279_v11 = vpop.permute.xlu1 %278  ;;  %v1032_v15 = vpack.c.bf16 %v463_v7, %v459_v24  ;;  %v1064_v16 = vpack.c.bf16 %v465_v8, %v461_v48  ;;  %v405_v19 = vmul.f32 0.2, %v341_v63  ;;  %v209_v22 = vmul.f32 %v1330_v60, %v114_v55 }
  0x96   :  { %v274_v12 = vpop.permute.xlu0 %273  ;;  %v1371_v17 = vadd.f32 %v279_v11, %v207_v4  ;;  %v1373_v18 = vadd.f32 %v279_v11, %v208_v5  ;;  %v205_v20 = vmul.f32 %v1330_v60, %v109_v56  ;;  %v1377_v21 = vadd.f32 %v279_v11, %v210_v6 }
  0x97   :  { %v409_v23 = vmul.f32 0.2, %v1360_v49  ;;  %1033 = vmatpush1.bf16.msra.mxu0 %v1032_v15  ;;  %1065 = vmatpush1.bf16.msra.mxu1 %v1064_v16  ;;  %v206_v25 = vmul.f32 %v1328_v59, %v109_v56  ;;  %v1381_v26 = vadd.f32 %v274_v12, %v203_v9  ;;  %v348_v24 = vadd.f32 %v274_v12, %v204_v10 }
  0x98   :  { %v1383_v27 = vadd.f32 %v279_v11, %v209_v22  ;;  %v1386_v28 = vmul.f32 0.2, %v1371_v17  ;;  %v416_v29 = vmul.f32 0.2, %v1373_v18  ;;  %v1034_v30 = vpack.c.bf16 %v472_v14, %v468_v13 }
  0x99   :  { %v124_v31 = vpop.permute.xlu1 %123  ;;  %v418_v33 = vmul.f32 0.2, %v1377_v21  ;;  %v1390_v34 = vadd.f32 %v274_v12, %v205_v20  ;;  %v350_v35 = vadd.f32 %v274_v12, %v206_v25  ;;  %v470_v36 = vmax.f32 %v1358_v43, %v406_v2 }
  0x9a   :  { %v119_v32 = vpop.permute.xlu0 %118  ;;  %1035 = vmatprep.subr.bf16.mxu0 %v1034_v30  ;;  %v474_v38 = vmax.f32 %v1353_v39, %v410_v62  ;;  %v467_v40 = vmax.f32 %v1356_v41, %v403_v1  ;;  %v471_v42 = vmax.f32 %v1351_v37, %v407_v61  ;;  %v469_v44 = vmax.f32 %v341_v63, %v405_v19 }
  0x9b   :  { %v411_v46 = vmul.f32 0.2, %v1381_v26  ;;  %v412_v47 = vmul.f32 0.2, %v348_v24  ;;  %v473_v48 = vmax.f32 %v1360_v49, %v409_v23  ;;  %v215_v52 = vmul.f32 %v1324_v57, %v124_v31 }
  0x9c   :  { %v1066_v53 = vpack.c.bf16 %v474_v38, %v470_v36  ;;  %v1036_v54 = vpack.c.bf16 %v471_v42, %v467_v40  ;;  %v216_v55 = vmul.f32 %v1326_v58, %v124_v31  ;;  %v217_v43 = vmul.f32 %v1330_v60, %v124_v31 }
  0x9d   :  { %v289_v56 = vpop.permute.xlu1 %288  ;;  %v1068_v62 = vpack.c.bf16 %v473_v48, %v469_v44  ;;  %v218_v41 = vmul.f32 %v1328_v59, %v124_v31  ;;  %v211_v37 = vmul.f32 %v1324_v57, %v119_v32  ;;  %v212_v61 = vmul.f32 %v1326_v58, %v119_v32 }
  0x9e   :  { %v284_v39 = vpop.permute.xlu0 %283  ;;  %v414_v63 = vmul.f32 0.2, %v350_v35  ;;  %1067 = vmatprep.subr.bf16.mxu1 %v1066_v53  ;;  %1037 = vmatpush1.bf16.msra.mxu0 %v1036_v54  ;;  %v213_v49 = vmul.f32 %v1330_v60, %v119_v32  ;;  %v1405_v0 = vadd.f32 %v289_v56, %v215_v52  ;;  %v1407_v1 = vadd.f32 %v289_v56, %v216_v55 }
  0x9f   :  { %v413_v2 = vmul.f32 0.2, %v1390_v34  ;;  %1069 = vmatpush1.bf16.msra.mxu1 %v1068_v62  ;;  %v214_v3 = vmul.f32 %v1328_v59, %v119_v32  ;;  %v1411_v4 = vadd.f32 %v289_v56, %v218_v41  ;;  %v1413_v5 = vadd.f32 %v284_v39, %v211_v37 }
  0xa0   :  { %v417_v6 = vmul.f32 0.2, %v1383_v27  ;;  %v1416_v7 = vadd.f32 %v289_v56, %v217_v43  ;;  %v1418_v8 = vadd.f32 %v284_v39, %v212_v61  ;;  %v1420_v9 = vadd.f32 %v284_v39, %v213_v49 }
  0xa1   :  { %v134_v10 = vpop.permute.xlu1 %133  ;;  %v1423_v12 = vmul.f32 0.2, %v1405_v0  ;;  %v424_v13 = vmul.f32 0.2, %v1407_v1  ;;  %v358_v14 = vadd.f32 %v284_v39, %v214_v3  ;;  %v476_v15 = vmax.f32 %v348_v24, %v412_v47 }
  0xa2   :  { %v129_v11 = vpop.permute.xlu0 %128  ;;  %v426_v16 = vmul.f32 0.2, %v1411_v4  ;;  %v419_v19 = vmul.f32 0.2, %v1413_v5  ;;  %v480_v22 = vmax.f32 %v1373_v18, %v416_v29  ;;  %v478_v20 = vmax.f32 %v350_v35, %v414_v63 }
  0xa3   :  { %v482_v23 = vmax.f32 %v1377_v21, %v418_v33  ;;  %v475_v25 = vmax.f32 %v1381_v26, %v411_v46  ;;  %v479_v30 = vmax.f32 %v1371_v17, %v1386_v28  ;;  %v477_v31 = vmax.f32 %v1390_v34, %v413_v2 }
  0xa4   :  { %v420_v32 = vmul.f32 0.2, %v1418_v8  ;;  %v1038_v36 = vpack.c.bf16 %v480_v22, %v476_v15  ;;  %v481_v24 = vmax.f32 %v1383_v27, %v417_v6  ;;  %v223_v38 = vmul.f32 %v1324_v57, %v134_v10 }
  0xa5   :  { %v299_v40 = vpop.permute.xlu1 %298  ;;  %v1070_v18 = vpack.c.bf16 %v482_v23, %v478_v20  ;;  %v1040_v29 = vpack.c.bf16 %v479_v30, %v475_v25  ;;  %v224_v21 = vmul.f32 %v1326_v58, %v134_v10  ;;  %v225_v26 = vmul.f32 %v1330_v60, %v134_v10 }
  0xa6   :  { %v294_v42 = vpop.permute.xlu0 %293  ;;  %1039 = vmatprep.subr.bf16.mxu0 %v1038_v36  ;;  %v1072_v33 = vpack.c.bf16 %v481_v24, %v477_v31  ;;  %v226_v17 = vmul.f32 %v1328_v59, %v134_v10  ;;  %v219_v28 = vmul.f32 %v1324_v57, %v129_v11  ;;  %v220_v34 = vmul.f32 %v1326_v58, %v129_v11 }
  0xa7   :  { %v422_v35 = vmul.f32 0.2, %v358_v14  ;;  %1071 = vmatprep.subr.bf16.mxu1 %v1070_v18  ;;  %1041 = vmatpush1.bf16.msra.mxu0 %v1040_v29  ;;  %v221_v27 = vmul.f32 %v1330_v60, %v129_v11  ;;  %v1443_v44 = vadd.f32 %v299_v40, %v223_v38  ;;  %v1445_v46 = vadd.f32 %v299_v40, %v224_v21 }
  0xa8   :  { %1073 = vmatpush1.bf16.msra.mxu1 %v1072_v33  ;;  %v222_v47 = vmul.f32 %v1328_v59, %v129_v11  ;;  %v1448_v48 = vadd.f32 %v299_v40, %v226_v17  ;;  %v1450_v52 = vadd.f32 %v294_v42, %v219_v28  ;;  %v1452_v53 = vadd.f32 %v294_v42, %v220_v34 }
  0xa9   :  { %v144_v54 = vpop.permute.xlu1 %143  ;;  %v425_v43 = vmul.f32 0.2, %v1416_v7  ;;  %v421_v56 = vmul.f32 0.2, %v1420_v9  ;;  %v1456_v39 = vadd.f32 %v299_v40, %v225_v26  ;;  %v1459_v62 = vmul.f32 0.2, %v1443_v44 }
  0xaa   :  { %v139_v55 = vpop.permute.xlu0 %138  ;;  %v432_v41 = vmul.f32 0.2, %v1445_v46  ;;  %v1462_v37 = vadd.f32 %v294_v42, %v221_v27  ;;  %v366_v61 = vadd.f32 %v294_v42, %v222_v47  ;;  %v484_v63 = vmax.f32 %v1418_v8, %v420_v32 }
  0xab   :  { %v434_v49 = vmul.f32 0.2, %v1448_v48  ;;  %v427_v2 = vmul.f32 0.2, %v1450_v52  ;;  %v428_v3 = vmul.f32 0.2, %v1452_v53  ;;  %v488_v6 = vmax.f32 %v1407_v1, %v424_v13 }
  0xac   :  { %v486_v10 = vmax.f32 %v358_v14, %v422_v35  ;;  %v490_v11 = vmax.f32 %v1411_v4, %v426_v16  ;;  %v483_v15 = vmax.f32 %v1413_v5, %v419_v19  ;;  %v487_v22 = vmax.f32 %v1405_v0, %v1423_v12 }
  0xad   :  { %v309_v20 = vpop.permute.xlu1 %308  ;;  %v1042_v25 = vpack.c.bf16 %v488_v6, %v484_v63  ;;  %v485_v8 = vmax.f32 %v1420_v9, %v421_v56  ;;  %v489_v30 = vmax.f32 %v1416_v7, %v425_v43  ;;  %v231_v31 = vmul.f32 %v1324_v57, %v144_v54 }
  0xae   :  { %v304_v23 = vpop.permute.xlu0 %303  ;;  %v1074_v32 = vpack.c.bf16 %v490_v11, %v486_v10  ;;  %v1044_v36 = vpack.c.bf16 %v487_v22, %v483_v15  ;;  %v232_v1 = vmul.f32 %v1326_v58, %v144_v54  ;;  %v233_v4 = vmul.f32 %v1330_v60, %v144_v54 }
  0xaf   :  { %1043 = vmatprep.subr.bf16.mxu0 %v1042_v25  ;;  %v1076_v5 = vpack.c.bf16 %v489_v30, %v485_v8  ;;  %v234_v13 = vmul.f32 %v1328_v59, %v144_v54  ;;  %v227_v0 = vmul.f32 %v1324_v57, %v139_v55  ;;  %v228_v12 = vmul.f32 %v1326_v58, %v139_v55 }
  0xb0   :  { %v430_v14 = vmul.f32 0.2, %v366_v61  ;;  %1075 = vmatprep.subr.bf16.mxu1 %v1074_v32  ;;  %1045 = vmatpush1.bf16.msra.mxu0 %v1044_v36  ;;  %v229_v7 = vmul.f32 %v1330_v60, %v139_v55  ;;  %v230_v9 = vmul.f32 %v1328_v59, %v139_v55  ;;  %v1483_v16 = vadd.f32 %v309_v20, %v231_v31 }
  0xb1   :  { %v154_v19 = vpop.permute.xlu1 %153  ;;  %1077 = vmatpush1.bf16.msra.mxu1 %v1076_v5  ;;  %v1485_v38 = vadd.f32 %v309_v20, %v232_v1  ;;  %v1487_v40 = vadd.f32 %v309_v20, %v233_v4  ;;  %v1489_v42 = vadd.f32 %v309_v20, %v234_v13  ;;  %v1491_v18 = vadd.f32 %v304_v23, %v227_v0 }
  0xb2   :  { %v149_v24 = vpop.permute.xlu0 %148  ;;  %v433_v29 = vmul.f32 0.2, %v1456_v39  ;;  %v429_v21 = vmul.f32 0.2, %v1462_v37  ;;  %v1496_v26 = vmul.f32 0.2, %v1483_v16  ;;  %v372_v33 = vadd.f32 %v304_v23, %v228_v12 }
  0xb3   :  { %v1498_v17 = vadd.f32 %v304_v23, %v229_v7  ;;  %v374_v28 = vadd.f32 %v304_v23, %v230_v9  ;;  %v492_v34 = vmax.f32 %v1452_v53, %v428_v3  ;;  %v440_v35 = vmul.f32 0.2, %v1485_v38 }
  0xb4   :  { %v441_v27 = vmul.f32 0.2, %v1487_v40  ;;  %v442_v47 = vmul.f32 0.2, %v1489_v42  ;;  %v496_v54 = vmax.f32 %v1445_v46, %v432_v41  ;;  %v435_v43 = vmul.f32 0.2, %v1491_v18 }
  0xb5   :  { %v319_v55 = vpop.permute.xlu1 %318  ;;  %v494_v56 = vmax.f32 %v366_v61, %v430_v14  ;;  %v498_v63 = vmax.f32 %v1448_v48, %v434_v49  ;;  %v491_v6 = vmax.f32 %v1450_v52, %v427_v2  ;;  %v495_v53 = vmax.f32 %v1443_v44, %v1459_v62 }
  0xb6   :  { %v314_v10 = vpop.permute.xlu0 %313  ;;  %v1046_v11 = vpack.c.bf16 %v496_v54, %v492_v34  ;;  %v493_v3 = vmax.f32 %v1462_v37, %v429_v21  ;;  %v497_v15 = vmax.f32 %v1456_v39, %v433_v29  ;;  %v436_v22 = vmul.f32 0.2, %v372_v33 }
  0xb7   :  { %v1078_v20 = vpack.c.bf16 %v498_v63, %v494_v56  ;;  %v239_v46 = vmul.f32 %v1324_v57, %v154_v19  ;;  %v240_v41 = vmul.f32 %v1326_v58, %v154_v19  ;;  %v1048_v61 = vpack.c.bf16 %v495_v53, %v491_v6 }
  0xb8   :  { %1047 = vmatprep.subr.bf16.mxu0 %v1046_v11  ;;  %v1080_v48 = vpack.c.bf16 %v497_v15, %v493_v3  ;;  %v241_v52 = vmul.f32 %v1330_v60, %v154_v19  ;;  %v242_v49 = vmul.f32 %v1328_v59, %v154_v19  ;;  %v235_v44 = vmul.f32 %v1324_v57, %v149_v24 }
  0xb9   :  { %1079 = vmatprep.subr.bf16.mxu1 %v1078_v20  ;;  %v236_v62 = vmul.f32 %v1326_v58, %v149_v24  ;;  %v237_v39 = vmul.f32 %v1330_v60, %v149_v24  ;;  %v1519_v37 = vadd.f32 %v319_v55, %v239_v46  ;;  %v438_v2 = vmul.f32 0.2, %v374_v28  ;;  %1049 = vmatpush1.bf16.msra.mxu0 %v1048_v61  ;;  %v164_v30 = vpop.permute.xlu1 %163 }
  0xba   :  { %1081 = vmatpush1.bf16.msra.mxu1 %v1080_v48  ;;  %v1521_v23 = vadd.f32 %v319_v55, %v240_v41  ;;  %v1523_v25 = vadd.f32 %v319_v55, %v241_v52  ;;  %v1525_v8 = vadd.f32 %v319_v55, %v242_v49  ;;  %v437_v31 = vmul.f32 0.2, %v1498_v17  ;;  %v159_v4 = vpop.permute.xlu0 %158 }
  0xbb   :  { %v238_v32 = vmul.f32 %v1328_v59, %v149_v24  ;;  %v1529_v36 = vadd.f32 %v314_v10, %v235_v44  ;;  %v380_v1 = vadd.f32 %v314_v10, %v236_v62  ;;  %v1532_v5 = vmul.f32 0.2, %v1519_v37 }
  0xbc   :  { %v448_v13 = vmul.f32 0.2, %v1521_v23  ;;  %v1536_v0 = vmul.f32 0.2, %v1523_v25  ;;  %v1538_v12 = vadd.f32 %v314_v10, %v237_v39  ;;  %v450_v14 = vmul.f32 0.2, %v1525_v8 }
  0xbd   :  { %v382_v7 = vadd.f32 %v314_v10, %v238_v32  ;;  %v443_v9 = vmul.f32 0.2, %v1529_v36  ;;  %v500_v19 = vmax.f32 %v372_v33, %v436_v22  ;;  %v444_v24 = vmul.f32 0.2, %v380_v1  ;;  %v329_v53 = vpop.permute.xlu1 %328 }
  0xbe   :  { %v504_v29 = vmax.f32 %v1485_v38, %v440_v35  ;;  %v502_v21 = vmax.f32 %v374_v28, %v438_v2  ;;  %v506_v34 = vmax.f32 %v1489_v42, %v442_v47  ;;  %v499_v54 = vmax.f32 %v1491_v18, %v435_v43  ;;  %v324_v35 = vpop.permute.xlu0 %323 }
  0xbf   :  { %v503_v55 = vmax.f32 %v1483_v16, %v1496_v26  ;;  %v501_v56 = vmax.f32 %v1498_v17, %v437_v31  ;;  %v505_v63 = vmax.f32 %v1487_v40, %v441_v27  ;;  %v247_v11 = vmul.f32 %v1324_v57, %v164_v30 }
  0xc0   :  { %v1050_v6 = vpack.c.bf16 %v504_v29, %v500_v19  ;;  %v1082_v10 = vpack.c.bf16 %v506_v34, %v502_v21  ;;  %v248_v33 = vmul.f32 %v1326_v58, %v164_v30  ;;  %v249_v42 = vmul.f32 %v1330_v60, %v164_v30 }
  0xc1   :  { %v1052_v38 = vpack.c.bf16 %v503_v55, %v499_v54  ;;  %v1084_v28 = vpack.c.bf16 %v505_v63, %v501_v56  ;;  %v250_v18 = vmul.f32 %v1328_v59, %v164_v30  ;;  %v445_v16 = vmul.f32 0.2, %v1538_v12  ;;  %v62_v55 = vld [vmem:[%s1654_s3 + $0x10] sm:$0xff]  ;;  %v63_v56 = vld [vmem:[%s1654_s3 + $0x18] sm:$0xff]  ;;  %v64_v63 = vld [vmem:[%s1654_s3 + $0x20] sm:$0xff] }
  0xc2   :  { %1051 = vmatprep.subr.bf16.mxu0 %v1050_v6  ;;  %1083 = vmatprep.subr.bf16.mxu1 %v1082_v10  ;;  %v243_v40 = vmul.f32 %v1324_v57, %v159_v4  ;;  %v244_v26 = vmul.f32 %v1326_v58, %v159_v4  ;;  %v245_v17 = vmul.f32 %v1330_v60, %v159_v4  ;;  %v446_v27 = vmul.f32 0.2, %v382_v7  ;;  %v65_v6 = vld [vmem:[%s1654_s3 + $0x28] sm:$0xff]  ;;  %v66_v10 = vld [vmem:[%s1654_s3 + $0x30] sm:$0xff] }
  0xc3   :  { %1053 = vmatpush1.bf16.msra.mxu0 %v1052_v38  ;;  %1085 = vmatpush1.bf16.msra.mxu1 %v1084_v28  ;;  %v246_v47 = vmul.f32 %v1328_v59, %v159_v4  ;;  %v391_v43 = vadd.f32 %v329_v53, %v247_v11  ;;  %v392_v3 = vadd.f32 %v329_v53, %v248_v33  ;;  %v67_v11 = vld [vmem:[%s1654_s3 + $0x38] sm:$0xff]  ;;  %v526_v33 = vpop.permute.xlu0 %525 }
  0xc4   :  { %v393_v15 = vadd.f32 %v329_v53, %v249_v42  ;;  %v394_v22 = vadd.f32 %v329_v53, %v250_v18  ;;  %v387_v20 = vadd.f32 %v324_v35, %v243_v40  ;;  %v388_v46 = vadd.f32 %v324_v35, %v244_v26  ;;  %v531_v53 = vpop.permute.xlu1 %530 }
  0xc5   :  { %v455_v41 = vmul.f32 0.2, %v391_v43  ;;  %v456_v61 = vmul.f32 0.2, %v392_v3  ;;  %v389_v48 = vadd.f32 %v324_v35, %v245_v17  ;;  %v390_v52 = vadd.f32 %v324_v35, %v246_v47 }
  0xc6   :  { %v457_v57 = vmul.f32 0.2, %v393_v15  ;;  %v458_v49 = vmul.f32 0.2, %v394_v22  ;;  %v451_v58 = vmul.f32 0.2, %v387_v20  ;;  %v508_v44 = vmax.f32 %v380_v1, %v444_v24 }
  0xc7   :  { %v452_v60 = vmul.f32 0.2, %v388_v46  ;;  %v453_v62 = vmul.f32 0.2, %v389_v48  ;;  %v454_v39 = vmul.f32 0.2, %v390_v52  ;;  %v512_v2 = vmax.f32 %v1521_v23, %v448_v13  ;;  %v536_v38 = vpop.permute.xlu0 %535 }
  0xc8   :  { %v510_v59 = vmax.f32 %v382_v7, %v446_v27  ;;  %v514_v30 = vmax.f32 %v1525_v8, %v450_v14  ;;  %v507_v31 = vmax.f32 %v1529_v36, %v443_v9  ;;  %v511_v32 = vmax.f32 %v1519_v37, %v1532_v5  ;;  %v61_v9 = vld [vmem:[%s1654_s3 + $0x8] sm:$0xff]  ;;  %v1604_v28 = vpop.permute.xlu1 %540 }
  0xc9   :  { %v1054_v4 = vpack.c.bf16 %v512_v2, %v508_v44  ;;  %v509_v19 = vmax.f32 %v1538_v12, %v445_v16  ;;  %v513_v29 = vmax.f32 %v1523_v25, %v1536_v0  ;;  %v516_v1 = vmax.f32 %v388_v46, %v452_v60  ;;  %v60_v0 = vld [vmem:[%s1654_s3] sm:$0xff] }
  0xca   :  { %v1086_v24 = vpack.c.bf16 %v514_v30, %v510_v59  ;;  %v1056_v21 = vpack.c.bf16 %v511_v32, %v507_v31  ;;  %v520_v34 = vmax.f32 %v392_v3, %v456_v61  ;;  %v518_v54 = vmax.f32 %v390_v52, %v454_v39 }
  0xcb   :  { %1055 = vmatprep.subr.bf16.mxu0 %v1054_v4  ;;  %v1088_v23 = vpack.c.bf16 %v513_v29, %v509_v19  ;;  %v522_v13 = vmax.f32 %v394_v22, %v458_v49  ;;  %v515_v8 = vmax.f32 %v387_v20, %v451_v58  ;;  %v519_v14 = vmax.f32 %v391_v43, %v455_v41  ;;  %v1606_v42 = vpop.permute.xlu0 %545 }
  0xcc   :  { %1087 = vmatprep.subr.bf16.mxu1 %v1086_v24  ;;  %1057 = vmatpush1.bf16.msra.mxu0 %v1056_v21  ;;  %v1058_v36 = vpack.c.bf16 %v520_v34, %v516_v1  ;;  %v517_v37 = vmax.f32 %v389_v48, %v453_v62  ;;  %v521_v5 = vmax.f32 %v393_v15, %v457_v57  ;;  %v856_v3 = vpop.permute.xlu1 %855 }
  0xcd   :  { %1089 = vmatpush1.bf16.msra.mxu1 %v1088_v23  ;;  %v1090_v12 = vpack.c.bf16 %v522_v13, %v518_v54  ;;  %v1060_v7 = vpack.c.bf16 %v519_v14, %v515_v8 }
  0xce   :  { %1059 = vmatprep.subr.bf16.mxu0 %v1058_v36  ;;  %v1092_v25 = vpack.c.bf16 %v521_v5, %v517_v37 }
  0xcf   :  { %1091 = vmatprep.subr.bf16.mxu1 %v1090_v12  ;;  %v861_v52 = vpop.permute.xlu0 %860 }
  0xd0   :  { %1061 = vmatpush1.bf16.msra.mxu0 %v1060_v7  ;;  %v1608_v23 = vpop.permute.xlu1 %550 }
  0xd1   :  { %1093 = vmatpush1.bf16.msra.mxu1 %v1092_v25 }
  0xd3   :  { %628 = vmatmul.mubr.f32.vlgmr.msra.gmra.mrb[0].mxu0 %v60_v0 }
  0xd4   :  { %741 = vmatmul.mubr.f32.vlgmr.msra.gmra.mrb[0].mxu1 %v60_v0  ;;  %633 = vmatprep.mubr.f32.mxu0 %v1125_v45  ;;  %v866_v0 = vpop.permute.xlu0 %865 }
  0xd5   :  { %746 = vmatprep.mubr.f32.mxu1 %v1125_v45 }
  0xd7   :  { %634 = vmatmul.mubr.f32.gmra.mrb[2].mxu0 %v61_v9 }
  0xd8   :  { %747 = vmatmul.mubr.f32.gmra.mrb[2].mxu1 %v61_v9  ;;  %639 = vmatprep.mubr.f32.mxu0 %v1125_v45 }
  0xd9   :  { %752 = vmatprep.mubr.f32.mxu1 %v1125_v45 }
  0xdb   :  { %640 = vmatmul.mubr.f32.gmra.mrb[4].mxu0 %v62_v55 }
  0xdc   :  { %753 = vmatmul.mubr.f32.gmra.mrb[4].mxu1 %v62_v55  ;;  %645 = vmatprep.mubr.f32.mxu0 %v1125_v45 }
  0xdd   :  { %758 = vmatprep.mubr.f32.mxu1 %v1125_v45 }
  0xdf   :  { %646 = vmatmul.mubr.f32.gmra.mrb[6].mxu0 %v63_v56 }
  0xe0   :  { %759 = vmatmul.mubr.f32.gmra.mrb[6].mxu1 %v63_v56  ;;  %651 = vmatprep.mubr.f32.mxu0 %v1125_v45 }
  0xe1   :  { %764 = vmatprep.mubr.f32.mxu1 %v1125_v45 }
  0xe3   :  { %652 = vmatmul.mubr.f32.gmra.mrb[8].mxu0 %v64_v63 }
  0xe4   :  { %765 = vmatmul.mubr.f32.gmra.mrb[8].mxu1 %v64_v63  ;;  %657 = vmatprep.mubr.f32.mxu0 %v1125_v45 }
  0xe5   :  { %770 = vmatprep.mubr.f32.mxu1 %v1125_v45 }
  0xe7   :  { %658 = vmatmul.mubr.f32.gmra.mrb[10].mxu0 %v65_v6 }
  0xe8   :  { %771 = vmatmul.mubr.f32.gmra.mrb[10].mxu1 %v65_v6  ;;  %663 = vmatprep.mubr.f32.mxu0 %v1125_v45 }
  0xe9   :  { %776 = vmatprep.mubr.f32.mxu1 %v1125_v45 }
  0xeb   :  { %664 = vmatmul.mubr.f32.gmra.mrb[12].mxu0 %v66_v10 }
  0xec   :  { %777 = vmatmul.mubr.f32.gmra.mrb[12].mxu1 %v66_v10  ;;  %669 = vmatprep.mubr.f32.mxu0 %v1125_v45 }
  0xed   :  { %782 = vmatprep.mubr.f32.mxu1 %v1125_v45 }
  0xef   :  { %670 = vmatmul.mubr.f32.gmra.mrb[14].mxu0 %v67_v11 }
  0xf0   :  { %783 = vmatmul.mubr.f32.gmra.mrb[14].mxu1 %v67_v11 }
 0x1a6   :  { %v629_v18 = vpop.f32.mrb[0].mxu0 }
 0x1a7   :  { %v630_v35 = vadd.f32 %v629_v18, %v526_v33  ;;  %v742_v16 = vpop.f32.mrb[0].mxu1  ;;  %v631_v40 = vpop.f32.mrb[1].mxu0 }
 0x1a8   :  { %v743_v26 = vadd.f32 %v742_v16, %v526_v33  ;;  %v632_v17 = vadd.f32 %v631_v40, %v526_v33  ;;  %v744_v27 = vpop.f32.mrb[1].mxu1 }
 0x1a9   :  { %v789_v47 = vmul.f32 0.2, %v630_v35  ;;  %v745_v43 = vadd.f32 %v744_v27, %v526_v33 }
 0x1aa   :  { %v791_v45 = vmul.f32 0.2, %v743_v26  ;;  %v790_v15 = vmul.f32 0.2, %v632_v17  ;;  %v635_v22 = vpop.f32.mrb[2].mxu0 }
 0x1ab   :  { %v821_v20 = vmax.f32 %v630_v35, %v789_v47  ;;  %v792_v46 = vmul.f32 0.2, %v745_v43  ;;  %v636_v41 = vadd.f32 %v635_v22, %v531_v53  ;;  %v748_v61 = vpop.f32.mrb[2].mxu1  ;;  %v637_v48 = vpop.f32.mrb[3].mxu0 }
 0x1ac   :  { %v823_v57 = vmax.f32 %v743_v26, %v791_v45  ;;  %v822_v49 = vmax.f32 %v632_v17, %v790_v15  ;;  %v749_v58 = vadd.f32 %v748_v61, %v531_v53  ;;  %v638_v44 = vadd.f32 %v637_v48, %v531_v53  ;;  %v750_v60 = vpop.f32.mrb[3].mxu1  ;;  %v1611_v45 = vpop.permute.xlu1 %555 }
 0x1ad   :  { %v893_v62 = vmul.f32 %v856_v3, %v821_v20  ;;  %v824_v39 = vmax.f32 %v745_v43, %v792_v46  ;;  %v793_v2 = vmul.f32 0.2, %v636_v41  ;;  %v751_v59 = vadd.f32 %v750_v60, %v531_v53 }
 0x1ae   :  { %v895_v30 = vmul.f32 %v856_v3, %v823_v57  ;;  %v894_v31 = vmul.f32 %v856_v3, %v822_v49  ;;  %v795_v32 = vmul.f32 0.2, %v749_v58  ;;  %v794_v4 = vmul.f32 0.2, %v638_v44  ;;  %v641_v19 = vpop.f32.mrb[4].mxu0 }
 0x1af   :  { %v896_v29 = vmul.f32 %v856_v3, %v824_v39  ;;  %v825_v1 = vmax.f32 %v636_v41, %v793_v2  ;;  %v796_v24 = vmul.f32 0.2, %v751_v59  ;;  %v642_v21 = vadd.f32 %v641_v19, %v536_v38  ;;  %v754_v34 = vpop.f32.mrb[4].mxu1  ;;  %v643_v54 = vpop.f32.mrb[5].mxu0 }
 0x1b0   :  { %v827_v13 = vmax.f32 %v749_v58, %v795_v32  ;;  %v826_v8 = vmax.f32 %v638_v44, %v794_v4  ;;  %v755_v14 = vadd.f32 %v754_v34, %v536_v38  ;;  %v644_v36 = vadd.f32 %v643_v54, %v536_v38  ;;  %v756_v37 = vpop.f32.mrb[5].mxu1  ;;  %v871_v44 = vpop.permute.xlu0 %870 }
 0x1b1   :  { %v897_v5 = vmul.f32 %v861_v52, %v825_v1  ;;  %v828_v12 = vmax.f32 %v751_v59, %v796_v24  ;;  %v797_v7 = vmul.f32 0.2, %v642_v21  ;;  %v757_v25 = vadd.f32 %v756_v37, %v536_v38 }
 0x1b2   :  { %v899_v9 = vmul.f32 %v861_v52, %v827_v13  ;;  %v898_v55 = vmul.f32 %v861_v52, %v826_v8  ;;  %v799_v56 = vmul.f32 0.2, %v755_v14  ;;  %v798_v63 = vmul.f32 0.2, %v644_v36  ;;  %v647_v6 = vpop.f32.mrb[6].mxu0 }
 0x1b3   :  { %v925_v10 = vadd.f32 %v897_v5, %v893_v62  ;;  %v900_v11 = vmul.f32 %v861_v52, %v828_v12  ;;  %v829_v33 = vmax.f32 %v642_v21, %v797_v7  ;;  %v800_v53 = vmul.f32 0.2, %v757_v25  ;;  %v760_v18 = vpop.f32.mrb[6].mxu1  ;;  %v649_v35 = vpop.f32.mrb[7].mxu0 }
 0x1b4   :  { %v951_v16 = vadd.f32 %v899_v9, %v895_v30  ;;  %v938_v40 = vadd.f32 %v898_v55, %v894_v31  ;;  %v831_v26 = vmax.f32 %v755_v14, %v799_v56  ;;  %v830_v17 = vmax.f32 %v644_v36, %v798_v63  ;;  %v762_v27 = vpop.f32.mrb[7].mxu1  ;;  %v876_v63 = vpop.permute.xlu0 %875 }
 0x1b5   :  { %v964_v47 = vadd.f32 %v900_v11, %v896_v29  ;;  %v901_v43 = vmul.f32 %v866_v0, %v829_v33  ;;  %v832_v38 = vmax.f32 %v757_v25, %v800_v53  ;;  %v648_v3 = vadd.f32 %v647_v6, %v1604_v28  ;;  %v1620_v25 = vpop.permute.xlu1 %560 }
 0x1b6   :  { %v903_v15 = vmul.f32 %v866_v0, %v831_v26  ;;  %v902_v22 = vmul.f32 %v866_v0, %v830_v17  ;;  %v761_v20 = vadd.f32 %v760_v18, %v1604_v28  ;;  %v650_v46 = vadd.f32 %v649_v35, %v1604_v28  ;;  %v653_v41 = vpop.f32.mrb[8].mxu0 }
 0x1b7   :  { %v926_v61 = vadd.f32 %v925_v10, %v901_v43  ;;  %v904_v48 = vmul.f32 %v866_v0, %v832_v38  ;;  %v801_v52 = vmul.f32 0.2, %v648_v3  ;;  %v763_v57 = vadd.f32 %v762_v27, %v1604_v28  ;;  %v766_v49 = vpop.f32.mrb[8].mxu1  ;;  %v655_v58 = vpop.f32.mrb[9].mxu0 }
 0x1b8   :  { %v952_v60 = vadd.f32 %v951_v16, %v903_v15  ;;  %v939_v62 = vadd.f32 %v938_v40, %v902_v22  ;;  %v803_v39 = vmul.f32 0.2, %v761_v20  ;;  %v802_v2 = vmul.f32 0.2, %v650_v46  ;;  %v768_v59 = vpop.f32.mrb[9].mxu1 }
 0x1b9   :  { %v965_v30 = vadd.f32 %v964_v47, %v904_v48  ;;  %v833_v31 = vmax.f32 %v648_v3, %v801_v52  ;;  %v804_v32 = vmul.f32 0.2, %v763_v57  ;;  %v654_v4 = vadd.f32 %v653_v41, %v1606_v42 }
 0x1ba   :  { %v835_v19 = vmax.f32 %v761_v20, %v803_v39  ;;  %v834_v29 = vmax.f32 %v650_v46, %v802_v2  ;;  %v767_v1 = vadd.f32 %v766_v49, %v1606_v42  ;;  %v656_v24 = vadd.f32 %v655_v58, %v1606_v42  ;;  %v659_v28 = vpop.f32.mrb[10].mxu0  ;;  %v881_v39 = vpop.permute.xlu1 %880 }
 0x1bb   :  { %v905_v21 = vmul.f32 %v871_v44, %v833_v31  ;;  %v836_v34 = vmax.f32 %v763_v57, %v804_v32  ;;  %v805_v54 = vmul.f32 0.2, %v654_v4  ;;  %v769_v13 = vadd.f32 %v768_v59, %v1606_v42  ;;  %v772_v8 = vpop.f32.mrb[10].mxu1  ;;  %v661_v14 = vpop.f32.mrb[11].mxu0 }
 0x1bc   :  { %v907_v36 = vmul.f32 %v871_v44, %v835_v19  ;;  %v906_v37 = vmul.f32 %v871_v44, %v834_v29  ;;  %v807_v5 = vmul.f32 0.2, %v767_v1  ;;  %v806_v12 = vmul.f32 0.2, %v656_v24  ;;  %v774_v7 = vpop.f32.mrb[11].mxu1 }
 0x1bd   :  { %v927_v0 = vadd.f32 %v926_v61, %v905_v21  ;;  %v908_v9 = vmul.f32 %v871_v44, %v836_v34  ;;  %v837_v55 = vmax.f32 %v654_v4, %v805_v54  ;;  %v808_v56 = vmul.f32 0.2, %v769_v13 }
 0x1be   :  { %v953_v6 = vadd.f32 %v952_v60, %v907_v36  ;;  %v940_v10 = vadd.f32 %v939_v62, %v906_v37  ;;  %v839_v11 = vmax.f32 %v767_v1, %v807_v5  ;;  %v838_v33 = vmax.f32 %v656_v24, %v806_v12  ;;  %v665_v53 = vpop.f32.mrb[12].mxu0 }
 0x1bf   :  { %v966_v42 = vadd.f32 %v965_v30, %v908_v9  ;;  %v909_v18 = vmul.f32 %v876_v63, %v837_v55  ;;  %v840_v35 = vmax.f32 %v769_v13, %v808_v56  ;;  %v660_v16 = vadd.f32 %v659_v28, %v1608_v23  ;;  %v778_v40 = vpop.f32.mrb[12].mxu1  ;;  %v667_v26 = vpop.f32.mrb[13].mxu0 }
 0x1c0   :  { %v911_v17 = vmul.f32 %v876_v63, %v839_v11  ;;  %v910_v27 = vmul.f32 %v876_v63, %v838_v33  ;;  %v773_v47 = vadd.f32 %v772_v8, %v1608_v23  ;;  %v662_v43 = vadd.f32 %v661_v14, %v1608_v23  ;;  %v780_v38 = vpop.f32.mrb[13].mxu1  ;;  %v886_v14 = vpop.permute.xlu0 %885 }
 0x1c1   :  { %v928_v3 = vadd.f32 %v927_v0, %v909_v18  ;;  %v912_v15 = vmul.f32 %v876_v63, %v840_v35  ;;  %v809_v22 = vmul.f32 0.2, %v660_v16  ;;  %v775_v20 = vadd.f32 %v774_v7, %v1608_v23 }
 0x1c2   :  { %v954_v46 = vadd.f32 %v953_v6, %v911_v17  ;;  %v941_v41 = vadd.f32 %v940_v10, %v910_v27  ;;  %v811_v61 = vmul.f32 0.2, %v773_v47  ;;  %v810_v48 = vmul.f32 0.2, %v662_v43  ;;  %v671_v52 = vpop.f32.mrb[14].mxu0  ;;  %v891_v27 = vpop.permute.xlu1 %890 }
 0x1c3   :  { %v967_v57 = vadd.f32 %v966_v42, %v912_v15  ;;  %v841_v49 = vmax.f32 %v660_v16, %v809_v22  ;;  %v812_v58 = vmul.f32 0.2, %v775_v20  ;;  %v666_v44 = vadd.f32 %v665_v53, %v1611_v45  ;;  %v784_v60 = vpop.f32.mrb[14].mxu1  ;;  %v673_v62 = vpop.f32.mrb[15].mxu0 }
 0x1c4   :  { %v843_v2 = vmax.f32 %v773_v47, %v811_v61  ;;  %v842_v59 = vmax.f32 %v662_v43, %v810_v48  ;;  %v779_v30 = vadd.f32 %v778_v40, %v1611_v45  ;;  %v668_v31 = vadd.f32 %v667_v26, %v1611_v45  ;;  %v786_v23 = vpop.f32.mrb[15].mxu1 }
 0x1c5   :  { %v913_v32 = vmul.f32 %v881_v39, %v841_v49  ;;  %v844_v4 = vmax.f32 %v775_v20, %v812_v58  ;;  %v813_v19 = vmul.f32 0.2, %v666_v44  ;;  %v781_v29 = vadd.f32 %v780_v38, %v1611_v45 }
 0x1c6   :  { %v915_v1 = vmul.f32 %v881_v39, %v843_v2  ;;  %v914_v24 = vmul.f32 %v881_v39, %v842_v59  ;;  %v815_v28 = vmul.f32 0.2, %v779_v30  ;;  %v814_v21 = vmul.f32 0.2, %v668_v31 }
 0x1c7   :  { %v929_v34 = vadd.f32 %v928_v3, %v913_v32  ;;  %v916_v54 = vmul.f32 %v881_v39, %v844_v4  ;;  %v845_v13 = vmax.f32 %v666_v44, %v813_v19  ;;  %v816_v8 = vmul.f32 0.2, %v781_v29 }
 0x1c8   :  { %v955_v36 = vadd.f32 %v954_v46, %v915_v1  ;;  %v942_v37 = vadd.f32 %v941_v41, %v914_v24  ;;  %v847_v5 = vmax.f32 %v779_v30, %v815_v28  ;;  %v846_v12 = vmax.f32 %v668_v31, %v814_v21 }
 0x1c9   :  { %v968_v7 = vadd.f32 %v967_v57, %v916_v54  ;;  %v917_v0 = vmul.f32 %v886_v14, %v845_v13  ;;  %v848_v9 = vmax.f32 %v781_v29, %v816_v8  ;;  %v672_v55 = vadd.f32 %v671_v52, %v1620_v25 }
 0x1ca   :  { %v919_v56 = vmul.f32 %v886_v14, %v847_v5  ;;  %v918_v45 = vmul.f32 %v886_v14, %v846_v12  ;;  %v785_v63 = vadd.f32 %v784_v60, %v1620_v25  ;;  %v674_v6 = vadd.f32 %v673_v62, %v1620_v25 }
 0x1cb   :  { %v930_v10 = vadd.f32 %v929_v34, %v917_v0  ;;  %v920_v11 = vmul.f32 %v886_v14, %v848_v9  ;;  %v817_v33 = vmul.f32 0.2, %v672_v55  ;;  %v787_v53 = vadd.f32 %v786_v23, %v1620_v25 }
 0x1cc   :  { %v956_v42 = vadd.f32 %v955_v36, %v919_v56  ;;  %v943_v18 = vadd.f32 %v942_v37, %v918_v45  ;;  %v819_v35 = vmul.f32 0.2, %v785_v63  ;;  %v818_v16 = vmul.f32 0.2, %v674_v6 }
 0x1cd   :  { %v969_v40 = vadd.f32 %v968_v7, %v920_v11  ;;  %v849_v26 = vmax.f32 %v672_v55, %v817_v33  ;;  %v820_v17 = vmul.f32 0.2, %v787_v53  ;;  %v1126_v30 = vmov 1966171168  }
 0x1ce   :  { %v851_v47 = vmax.f32 %v785_v63, %v819_v35  ;;  %v850_v43 = vmax.f32 %v674_v6, %v818_v16  ;;  %v989_v31 = vunpack.c.l.s4 %v1126_v30  ;;  %v977_v21 = vstv %s1657_s6  ;;  %s1100_s6 = scalar_lea.vmem %s1023_s18, 64 }
 0x1cf   :  { %v921_v38 = vmul.f32 %v891_v27, %v849_v26  ;;  %v852_v3 = vmax.f32 %v787_v53, %v820_v17  ;;  %p1101_p0 = scmp.ne.s32.totalorder %s1023_s18, %s1100_s6  ;;  %p1106_p2 = scmp.lt.s32.totalorder %s1100_s6, %s1100_s6 }
 0x1d0   :  { %v923_v15 = vmul.f32 %v891_v27, %v851_v47  ;;  %v922_v22 = vmul.f32 %v891_v27, %v850_v43  ;;  %v990_v34 = vunpack.c.0.s8 %v989_v31 }
 0x1d1   :  { %v931_v20 = vadd.f32 %v930_v10, %v921_v38  ;;  %v924_v46 = vmul.f32 %v891_v27, %v852_v3  ;;  %p1107_p3 = por %p1106_p2, %p1105_p1 }
 0x1d2   :  { %v957_v41 = vadd.f32 %v956_v42, %v923_v15  ;;  %v944_v61 = vadd.f32 %v943_v18, %v922_v22  ;;  %v993_v7 = vsub.s32 %v990_v34, %v1315_v51 }
 0x1d3   :  { %v932_v48 = vrot.slane %v931_v20, 4  ;;  %v970_v25 = vadd.f32 %v969_v40, %v924_v46  ;;  %p1108_p4 = pnand %p1107_p3, %p1101_p0 }
 0x1d4   :  { %v958_v52 = vrot.slane %v957_v41, 4  ;;  %v945_v57 = vrot.slane %v944_v61, 4 }
 0x1d5   :  { %v933_v49 = vadd.f32 %v932_v48, %v931_v20  ;;  %v971_v58 = vrot.slane %v970_v25, 4 }
 0x1d6   :  { %v959_v44 = vadd.f32 %v958_v52, %v957_v41  ;;  %v946_v60 = vadd.f32 %v945_v57, %v944_v61 }
 0x1d7   :  { %v934_v62 = vrot.slane %v933_v49, 2  ;;  %v972_v39 = vadd.f32 %v971_v58, %v970_v25 }
 0x1d8   :  { %v960_v2 = vrot.slane %v959_v44, 2  ;;  %v947_v59 = vrot.slane %v946_v60, 2 }
 0x1d9   :  { %v935_v23 = vadd.f32 %v934_v62, %v933_v49  ;;  %v973_v32 = vrot.slane %v972_v39, 2 }
 0x1da   :  { %v961_v4 = vadd.f32 %v960_v2, %v959_v44  ;;  %v948_v19 = vadd.f32 %v947_v59, %v946_v60 }
 0x1db   :  { %v936_v29 = vrot.slane %v935_v23, 1  ;;  %v974_v1 = vadd.f32 %v973_v32, %v972_v39 }
 0x1dc   :  { %v962_v24 = vrot.slane %v961_v4, 1  ;;  %v949_v28 = vrot.slane %v948_v19, 1 }
 0x1dd   :  { %v937_v54 = vadd.f32 %v936_v29, %v935_v23  ;;  %v975_v13 = vrot.slane %v974_v1, 1 }
 0x1de   :  { %v963_v8 = vadd.f32 %v962_v24, %v961_v4  ;;  %v950_v14 = vadd.f32 %v949_v28, %v948_v19 }
 0x1df   :  { %v976_v36 = vadd.f32 %v975_v13, %v974_v1  ;;  %v978_v37 = vadd.f32 %v977_v21, %v937_v54 }
 0x1e0   :  { %v979_v5 = vadd.f32 %v977_v21, %v950_v14  ;;  %v980_v12 = vadd.f32 %v977_v21, %v963_v8 }
 0x1e1   :  { %v981_v0 = vadd.f32 %v977_v21, %v976_v36 }
 0x1e2   :  { %v986_v9 = vcombine.low %v978_v37, %v979_v5 }
 0x1e3   :  { %v987_v55 = vcombine.low %v980_v12, %v981_v0 }
 0x1e4   :  { %v994_v56 = vrot.slane %v986_v9, %v993_v7 }
 0x1e5   :  { %v1001_v45 = vrot.slane %v987_v55, %v993_v7 }
 0x1e7   :  { %v1002_v63 = vcombine.low %v994_v56, %v1001_v45 }
 0x1e9   :  { %v1009_v6 = vrot.slane %v1002_v63, %v993_v7 }
 0x1eb   :  { %1015 = vst.msk [vmem:[#allocation3] sm:$0xf] %vm1013_vm0, %v1009_v6 }
 0x1ec   :  { %1111 = shalt.err (!%p1108_p4)
}
 0x1ed   :  { %s1112_s21 = scalar_lea.hbm %s1658_s7, 64 }
 0x1ee   :  { %p1113_p5 = scmp.ne.s32.totalorder %s1658_s7, %s1112_s21  ;;  %p1116_p6 = scmp.lt.u32.totalorder %s1112_s21, %s1658_s7 }
 0x1f0   :  { %p1118_p7 = pnand %p1116_p6, %p1113_p5 }
 0x1f2   :  { %1121 = shalt.err (!%p1118_p7)
}
 0x1f3   :  { %1025 = dma.vmem_to_hbm [thread:$0]  %s1023_s18, 64, %s1658_s7, [#allocation4]  }
 0x1f4   :  { %1122 = dma.done.wait [#allocation4], 64  }
 0x1f5   :  { %1123 = vsyncadd [#allocation4], 4294967232 }
 0x1f6   :  { %1029 = vsyncpa [#allocation4], 1 }

</bundles_post_ra>
